<compile_context>
chip_gen: v5e
topology: v5e:2x2
jax: 0.10.0
libtpu: 0.0.40
codegen_flags: <defaults>
</compile_context>

<pallas_src>
import functools

import jax
import jax.numpy as jnp
from jax.experimental import pallas as pl
from jax.experimental.pallas import tpu as pltpu


def _scatter_row_kernel(idx_ref, x_row_ref, dst_init_ref, out_row_ref):
    # idx_ref:      (N,) int32 in SMEM (scalar prefetch); only the index_maps use it.
    # x_row_ref:    (1, 1, F) VMEM   -- row i of the pooled features.
    # dst_init_ref: (M, 1, F) HBM    -- zero-filled buffer aliased to the output
    #                                   (never read/written by the kernel body).
    # out_row_ref:  (1, 1, F) VMEM   -- output row pooling_indices[i].
    del idx_ref, dst_init_ref
    out_row_ref[...] = x_row_ref[...]  # pure copy in the native dtype


@functools.partial(jax.jit, static_argnums=(2,))
def graph_unpooling(x, edge_index, upsampled_size, pooling_indices):
    """Pallas equivalent of GraphUnpooling.forward.

    x:               (N, F) pooled node features
    edge_index:      (2, E) int array, passed through unchanged
    upsampled_size:  int (static), number of rows M of the unpooled feature matrix
    pooling_indices: (N,) int array, row positions of x inside the output
    returns (upsampled_x, upsampled_edge_index)
    """
    n, f = x.shape
    m = int(upsampled_size)

    # (rows, 1, F) layout so each per-row block is (1, 1, F): the block's last
    # two dims equal the array's last two dims, which is always legal TPU tiling.
    x3 = x.reshape(n, 1, f)

    # Indices in SMEM drive the output index_map.  Clamp for DMA safety
    # (out-of-range writes would otherwise fault the chip).
    idx = jnp.clip(pooling_indices.astype(jnp.int32).reshape(n), 0, m - 1)

    # Zero-initialized destination, donated to the output via input_output_aliases:
    # grid steps overwrite exactly the scattered rows; the rest stays zero.
    dst_init = jnp.zeros((m, 1, f), dtype=x.dtype)

    out3 = pl.pallas_call(
        _scatter_row_kernel,
        out_shape=jax.ShapeDtypeStruct((m, 1, f), x.dtype),
        grid_spec=pltpu.PrefetchScalarGridSpec(
            num_scalar_prefetch=1,           # pooling_indices -> SMEM
            grid=(n,),                       # one pooled row per step
            in_specs=[
                # Row i of x (double-buffered by the pipeline).
                pl.BlockSpec((1, 1, f), lambda i, idx_ref: (i, 0, 0)),
                # Donated zero buffer: stays in HBM, no auto-DMA, unused in body.
                pl.BlockSpec(memory_space=pl.ANY),
            ],
            # Data-dependent scatter destination: output row pooling_indices[i].
            out_specs=pl.BlockSpec(
                (1, 1, f), lambda i, idx_ref: (idx_ref[i], 0, 0)),
        ),
        # Flat operands are (idx, x3, dst_init) -> dst_init is input #2.
        input_output_aliases={2: 0},
        compiler_params=pltpu.CompilerParams(
            # Sequential grid: last write wins for duplicate indices.
            dimension_semantics=("arbitrary",)),
    )(idx, x3, dst_init)

    upsampled_x = out3.reshape(m, f)
    return upsampled_x, edge_index


if __name__ == "__main__":
    key = jax.random.PRNGKey(0)
    k_x, k_perm, k_e = jax.random.split(key, 3)

    N, F = 8, 32          # pooled nodes, feature dim
    M = 16                # upsampled (original) node count
    E = 12                # number of edges

    x = jax.random.normal(k_x, (N, F), dtype=jnp.float32)
    # Unique pooling indices (a subset of [0, M)), as graph pooling produces.
    pooling_indices = jax.random.permutation(k_perm, M)[:N].astype(jnp.int32)
    edge_index = jax.random.randint(k_e, (2, E), 0, M, dtype=jnp.int32)

    upsampled_x, upsampled_edge_index = graph_unpooling(
        x, edge_index, M, pooling_indices)
    upsampled_x = jax.block_until_ready(upsampled_x)

    # Reference (plain JAX) check of the scatter semantics.
    ref = jnp.zeros((M, F), dtype=x.dtype).at[pooling_indices].set(x)
    assert upsampled_x.shape == (M, F)
    assert upsampled_x.dtype == x.dtype
    assert jnp.allclose(upsampled_x, ref, atol=1e-6)
    assert jnp.array_equal(upsampled_edge_index, edge_index)

    print("KERNEL_OK")
</pallas_src>

<mosaic_0001>
module attributes {stable_mosaic.version = 11 : i64} {
  func.func @_scatter_row_kernel(%arg0: i32, %arg1: memref<8xi32, #tpu.memory_space<smem>>, %arg2: memref<1x1x32xf32, #tpu.memory_space<vmem>>, %arg3: memref<16x1x32xf32, #tpu.memory_space<any>>, %arg4: memref<1x1x32xf32, #tpu.memory_space<vmem>>) attributes {dimension_semantics = [#tpu.dimension_semantics<arbitrary>], iteration_bounds = array<i64: 8>, scalar_prefetch = 1 : i64, scratch_operands = 0 : i64, tpu.core_type = #tpu.core_type<tc>, window_params = [{transform_indices = @transform_0, window_bounds = array<i64: 1, 1, 32>}, {}, {transform_indices = @transform_2, window_bounds = array<i64: 1, 1, 32>}]} {
    %c0 = arith.constant 0 : index
    %c0_0 = arith.constant 0 : index
    %c0_1 = arith.constant 0 : index
    %0 = vector.load %arg2[%c0, %c0_0, %c0_1] : memref<1x1x32xf32, #tpu.memory_space<vmem>>, vector<1x1x32xf32>
    %c0_2 = arith.constant 0 : index
    %c0_3 = arith.constant 0 : index
    %c0_4 = arith.constant 0 : index
    %1 = vector.load %arg4[%c0_2, %c0_3, %c0_4] : memref<1x1x32xf32, #tpu.memory_space<vmem>>, vector<1x1x32xf32>
    tpu.vector_store %arg4[%c0_2, %c0_3, %c0_4], %0 {strides = array<i32>} : memref<1x1x32xf32, #tpu.memory_space<vmem>>, vector<1x1x32xf32>,
    return
  }
  func.func @transform_0(%arg0: i32, %arg1: memref<8xi32, #tpu.memory_space<smem>>) -> (i32, i32, i32) {
    %c0_i32 = arith.constant 0 : i32
    %c0_i32_0 = arith.constant 0 : i32
    %c0_i32_1 = arith.constant 0 : i32
    return %arg0, %c0_i32, %c0_i32_0 : i32, i32, i32
  }
  func.func @transform_2(%arg0: i32, %arg1: memref<8xi32, #tpu.memory_space<smem>>) -> (i32, i32, i32) {
    %0 = arith.index_cast %arg0 : i32 to index
    %1 = memref.load %arg1[%0] : memref<8xi32, #tpu.memory_space<smem>>
    %c0_i32 = arith.constant 0 : i32
    %c0_i32_0 = arith.constant 0 : i32
    %c0_i32_1 = arith.constant 0 : i32
    return %1, %c0_i32, %c0_i32_0 : i32, i32, i32
  }
}

</mosaic_0001>

<bundles_post_ra>
// kernel: graph_unpooling.1
= control target key start
LH: loop header
LB: loop body
LE: loop exit
PB: predicated region body
PF: predicated region fallthrough
CT: control target
= control target key end

     0   :  { %s210_s15 = smov [#allocation3]   ;;  %s240_s0 = inlined_call_operand.vmem [shape: s32[8], index: 0, kind: input, shape index: {}]   ;;  %s241_s1 = inlined_call_operand.vmem [shape: f32[8,1,32], index: 1, kind: input, shape index: {}]   ;;  %s242_s2 = inlined_call_operand.vmem [shape: f32[16,1,32], index: 2, kind: input, shape index: {}, may-alias: {2,3}]   ;;  %s243_s3 = inlined_call_operand.vmem [shape: f32[16,1,32], index: 3, kind: output, shape index: {}, may-alias: {2,3}]  }
   0x1   :  { %s9_s14 = sshll.u32 %s240_s0, 4  ;;  %s10_s14 = int_to_ptr.vmem [resolvable:$true] %s9_s14 }
   0x2   :  { %12 = dma.vmem_to_smem %s10_s14, 16, %s210_s15, [#allocation2] }
   0x3   :  { %204 = dma.done.wait [#allocation2], 16 }
   0x4   :  { %205 = vsyncadd [#allocation2], 4294967280 }
   0x5   :  { %15 = sfence }
   0x6   :  { %s206_s16 = smov 0  }
   0x7 LB: > { %s172_s17 = sadd.s32 4294967295, %s208_s16   ;;  %p176_p0 = scmp.ge.s32.totalorder %s208_s16, 1  ;;  %s208_s16 = sphi %s206_s16, %s21_s16  }
   0x8   : > { %p97_p1 = scmp.lt.s32.totalorder %s208_s16, 9 }
   0xa   : > { %p98_p2 = pnand %p176_p0, %p97_p1 }
   0xb   : > { %p114_p3 = scmp.lt.s32.totalorder (!%p98_p2), %s172_s17, 7  ;;  %s117_s2 = sld [smem:[#allocation3 + %s172_s17]] (!%p98_p2) }
   0xc   : > { %101 = sbr.rel (%p98_p2) target bundleno = 22 (0x16), region = 24 }
  0x11   : > { %s245_s17 = smov (!%p114_p3, %s172_s17), 7  ;;  %p118_p4 = scmp.lt.s32.totalorder %s117_s2, 15  ;;  %vm123_vm0 = vcmask 253952  }
  0x12   : > { %s116_s19 = scalar_lea.vmem %s241_s1, %s245_s17 }
  0x13   : > { %s247_s2 = smov (!%p118_p4, %s117_s2), 15  ;;  %v122_v0 = vld [vmem:[%s116_s19] sm:$0x1] }
  0x14   : > { %s120_s22 = scalar_lea.vmem %s243_s3, %s247_s2 }
  0x15   : > { %124 = vst.msk [vmem:[%s120_s22] sm:$0x1] %vm123_vm0, %v122_v0 }
  0x16 PF: > { %s21_s16 = sadd.s32 1, %s208_s16  }
  0x17   : > { %p18_p5 = scmp.ge.s32.totalorder %s21_s16, 10  }
  0x19   :  { %20 = sbr.rel (!%p18_p5) target bundleno = 7 (0x7), region = 54 }

</bundles_post_ra>
